<compile_context>
chip_gen: v6e
topology: v6e:2x2x1
jax: 0.10.0
libtpu: 0.0.40
codegen_flags: <defaults>
</compile_context>

<pallas_src>
import functools

import jax
import jax.numpy as jnp
from jax import lax
from jax.experimental import pallas as pl
from jax.experimental.pallas import tpu as pltpu


# --------------------------------------------------------------------------- #
# small helpers
# --------------------------------------------------------------------------- #
def _cdiv(a, b):
    return -(-a // b)


def _round_up(n, m):
    return _cdiv(n, m) * m


def _sublane(dtype):
    return {4: 8, 2: 16, 1: 32}.get(jnp.dtype(dtype).itemsize, 8)


@functools.lru_cache(maxsize=None)
def _vmem_budget_bytes():
    """~82% of physical VMEM: ~52 MiB on 64 MiB parts (v7x), ~105 MiB on 128 MiB."""
    cap = 64 * 1024 * 1024  # conservative default if the query is unavailable
    try:
        cap = int(pltpu.get_tpu_info().vmem_capacity_bytes)
    except Exception:
        pass
    return int(cap * 0.82)


def _probe_kernel(x_ref, o_ref):
    o_ref[...] = x_ref[...]


@functools.lru_cache(maxsize=None)
def _supports_single_buffering():
    """One-time, tiny probe for BlockSpec(pipeline_mode=pl.Buffered(1))."""
    try:
        spec = pl.BlockSpec((8, 128), lambda i: (0, 0), pipeline_mode=pl.Buffered(1))
        fn = pl.pallas_call(
            _probe_kernel,
            out_shape=jax.ShapeDtypeStruct((8, 128), jnp.float32),
            grid_spec=pltpu.PrefetchScalarGridSpec(
                num_scalar_prefetch=0, grid=(1,),
                in_specs=[spec],
                out_specs=pl.BlockSpec((8, 128), lambda i: (0, 0))),
        )
        jax.block_until_ready(fn(jnp.zeros((8, 128), jnp.float32)))
        return True
    except Exception:
        return False


# --------------------------------------------------------------------------- #
# kernels
# --------------------------------------------------------------------------- #
def _epilogue(y, x_f32, pkd, *, eps, d_real):
    """bias2 + residual + LayerNorm. pkd rows: 0=b2, 1=gamma, 2=beta."""
    y = y + pkd[0:1, :] + x_f32                      # padded cols stay exact zero
    d_pad = y.shape[-1]
    inv_d = 1.0 / float(d_real)                      # constant multiply, no divide
    mean = jnp.sum(y, axis=-1, keepdims=True) * inv_d          # no mask needed
    centered = y - mean
    if d_real != d_pad:                              # mask only when padded cols exist
        col = lax.broadcasted_iota(jnp.int32, (1, d_pad), 1)
        centered = jnp.where(col < d_real, centered, 0.0)
    var = jnp.sum(centered * centered, axis=-1, keepdims=True) * inv_d
    y_hat = centered * lax.rsqrt(var + eps)          # EUP rsqrt
    return y_hat * pkd[1:2, :] + pkd[2:3, :]


def _ffn_kernel_resident(x_ref, w1_ref, b1_ref, w2_ref, pkd_ref, o_ref, *,
                         eps, d_real, matmul_dtype):
    """Full weights resident in VMEM; grid=(n_row_tiles,)."""
    x = x_ref[...]
    xm = x.astype(matmul_dtype)
    h = jnp.dot(xm, w1_ref[...], preferred_element_type=jnp.float32)
    h = jnp.maximum(h + b1_ref[...], 0.0)
    y = jnp.dot(h.astype(matmul_dtype), w2_ref[...],
                preferred_element_type=jnp.float32)
    out = _epilogue(y, x.astype(jnp.float32), pkd_ref[...],
                    eps=eps, d_real=d_real)
    o_ref[...] = out.astype(o_ref.dtype)


def _ffn_kernel_tiled(x_ref, w1_ref, b1_ref, w2_ref, pkd_ref, o_ref,
                      acc_ref, *scratch, eps, d_real, matmul_dtype, cast_x):
    """Hidden dim tiled; grid=(n_row_tiles, n_hid_tiles); f32 accumulator."""
    k = pl.program_id(1)
    xcast_ref = scratch[0] if cast_x else None

    @pl.when(k == 0)
    def _init():
        acc_ref[...] = jnp.zeros_like(acc_ref)
        if cast_x:
            xcast_ref[...] = x_ref[...].astype(xcast_ref.dtype)   # cast once per row tile

    xm = xcast_ref[...] if cast_x else x_ref[...]
    h = jnp.dot(xm, w1_ref[...], preferred_element_type=jnp.float32)
    h = jnp.maximum(h + b1_ref[...], 0.0)
    acc_ref[...] += jnp.dot(h.astype(matmul_dtype), w2_ref[...],
                            preferred_element_type=jnp.float32)

    @pl.when(k == pl.num_programs(1) - 1)
    def _finish():
        out = _epilogue(acc_ref[...], x_ref[...].astype(jnp.float32),
                        pkd_ref[...], eps=eps, d_real=d_real)
        o_ref[...] = out.astype(o_ref.dtype)


# --------------------------------------------------------------------------- #
# planning / parameter preparation (hoistable & cacheable across calls)
# --------------------------------------------------------------------------- #
def plan_ffn(d_model, hidden, x_dtype, matmul_dtype=None, *, hidden_tile=None):
    """Static tiling plan: depends only on shapes/dtypes, not on x."""
    x_dtype = jnp.dtype(x_dtype)
    if matmul_dtype is None:
        # bf16 operands + f32 accumulation = high-throughput MXU path everywhere.
        matmul_dtype = jnp.bfloat16 if x_dtype == jnp.dtype(jnp.float32) else x_dtype
    matmul_dtype = jnp.dtype(matmul_dtype)

    wb = matmul_dtype.itemsize
    xb = x_dtype.itemsize
    ob = xb                                          # output dtype == x dtype
    d_pad = _round_up(d_model, 128)
    budget = _vmem_budget_bytes()
    single_buf = _supports_single_buffering()
    weight_bufs = 1 if single_buf else 2
    row_align = max(_sublane(x_dtype), _sublane(matmul_dtype))
    slack = 1.15

    def resident_need(rt, hp):
        weights = weight_bufs * 2 * d_pad * hp * wb            # full W1 + W2
        biases = weight_bufs * 8 * (hp + d_pad) * 4            # b1 + packed params
        io = 2 * rt * d_pad * (xb + ob)                        # x/out, double-buffered
        temps = rt * hp * (4 + wb) + 2 * rt * d_pad * 4        # h (f32 + cast), y
        return weights + biases + io + temps

    def tiled_need(rt, ht, hp):
        weights = 2 * 2 * d_pad * ht * wb                      # chunks, double-buffered
        biases = 2 * 8 * ht * 4 + weight_bufs * 8 * d_pad * 4
        io = 2 * rt * d_pad * (xb + ob)
        scratch = rt * d_pad * 4
        if matmul_dtype != x_dtype:
            scratch += rt * d_pad * wb                         # x cast scratch
        temps = rt * ht * (4 + wb) + rt * d_pad * 4
        return weights + biases + io + scratch + temps

    base = dict(d_model=int(d_model), hidden=int(hidden), d_pad=int(d_pad),
                x_dtype=x_dtype, matmul_dtype=matmul_dtype,
                row_align=int(row_align), single_buffer=bool(single_buf),
                vmem_limit=int(budget))

    # explicit hidden tiling requested
    if hidden_tile is not None and hidden_tile < hidden:
        ht = _round_up(min(int(hidden_tile), hidden), 128)
        h_pad = _round_up(hidden, ht)
        for rt in (1024, 512, 256, 128, 64, 32, 16, 8):
            if tiled_need(rt, ht, h_pad) * slack <= budget:
                break
        return dict(base, h_pad=int(h_pad), hidden_tile=int(ht), max_row_tile=int(rt))

    # preferred: full weight residency, collapse the hidden grid axis
    h_pad_res = _round_up(hidden, 128)
    for rt in (512, 256, 128, 64, 32, 16, 8):
        if resident_need(rt, h_pad_res) * slack <= budget:
            return dict(base, h_pad=int(h_pad_res), hidden_tile=None,
                        max_row_tile=int(rt))

    # fallback: hidden tiling with large row tiles to amortize weight streaming
    ht_base = _round_up(hidden, 256)
    candidates = sorted({c for c in (ht_base, 2048, 1024, 512, 256) if c <= ht_base},
                        reverse=True)
    for rt in (1024, 512, 256, 128, 64, 32, 16, 8):
        for ht in candidates:
            h_pad = _round_up(hidden, ht)
            if tiled_need(rt, ht, h_pad) * slack <= budget:
                return dict(base, h_pad=int(h_pad), hidden_tile=int(ht),
                            max_row_tile=int(rt))
    return dict(base, h_pad=int(_round_up(hidden, 256)), hidden_tile=256,
                max_row_tile=8)


def prepare_ffn_params(plan, w1, b1, w2, b2, gamma, beta):
    """Pad + cast parameters ONCE (cache the result across calls)."""
    d_model, hidden = plan['d_model'], plan['hidden']
    d_pad, h_pad = plan['d_pad'], plan['h_pad']
    mdt = plan['matmul_dtype']
    f32 = jnp.float32
    w1p = jnp.zeros((d_pad, h_pad), mdt).at[:d_model, :hidden].set(w1.astype(mdt))
    w2p = jnp.zeros((h_pad, d_pad), mdt).at[:hidden, :d_model].set(w2.astype(mdt))
    b1p = jnp.zeros((1, h_pad), f32).at[0, :hidden].set(b1.astype(f32))
    pkd = jnp.zeros((3, d_pad), f32)
    pkd = pkd.at[0, :d_model].set(b2.astype(f32))
    pkd = pkd.at[1, :d_model].set(gamma.astype(f32))
    pkd = pkd.at[2, :d_model].set(beta.astype(f32))
    return dict(w1p=w1p, b1p=b1p, w2p=w2p, pkd=pkd)


def _balanced_row_tile(n_rows, target, align):
    """Row tile that minimizes padding waste; >=2 tiles when rows allow (v7x TCs)."""
    n_rows = max(int(n_rows), 1)
    n_tiles = _cdiv(n_rows, target)
    if n_tiles == 1 and n_rows >= 16 * align:
        n_tiles = 2
    return max(_round_up(_cdiv(n_rows, n_tiles), align), align)


# --------------------------------------------------------------------------- #
# apply
# --------------------------------------------------------------------------- #
def ffn_apply(x, plan, params, *, eps=1e-5, row_tile=None):
    orig_shape = x.shape
    d_model = plan['d_model']
    assert orig_shape[-1] == d_model
    d_pad, h_pad = plan['d_pad'], plan['h_pad']
    ht = plan['hidden_tile']
    mdt = plan['matmul_dtype']
    row_align = plan['row_align']

    x2d = x.reshape(-1, d_model)
    n_rows = x2d.shape[0]

    if row_tile is None:
        row_tile = _balanced_row_tile(n_rows, plan['max_row_tile'], row_align)
    row_tile = _round_up(int(row_tile), row_align)
    rows_pad = _round_up(n_rows, row_tile)
    n_row_tiles = rows_pad // row_tile

    xp = x2d
    if rows_pad != n_rows or d_pad != d_model:
        xp = jnp.zeros((rows_pad, d_pad), x.dtype).at[:n_rows, :d_model].set(x2d)

    flops = 4 * rows_pad * d_pad * h_pad
    bytes_accessed = (xp.size * xp.dtype.itemsize
                      + params['w1p'].size * params['w1p'].dtype.itemsize
                      + params['w2p'].size * params['w2p'].dtype.itemsize
                      + (params['b1p'].size + params['pkd'].size) * 4
                      + rows_pad * d_pad * x.dtype.itemsize)
    cost = pl.CostEstimate(flops=int(flops), transcendentals=int(rows_pad),
                           bytes_accessed=int(bytes_accessed))

    def inv_spec(shape, index_map):
        # grid-invariant blocks: single VMEM buffer when supported
        if plan['single_buffer']:
            return pl.BlockSpec(shape, index_map, pipeline_mode=pl.Buffered(1))
        return pl.BlockSpec(shape, index_map)

    if ht is None:
        # ---------------- full-weight-resident path, 1-D grid ----------------
        kern = functools.partial(_ffn_kernel_resident, eps=float(eps),
                                 d_real=d_model, matmul_dtype=mdt)
        grid_spec = pltpu.PrefetchScalarGridSpec(
            num_scalar_prefetch=0,
            grid=(n_row_tiles,),
            in_specs=[
                pl.BlockSpec((row_tile, d_pad), lambda i: (i, 0)),   # x tile
                inv_spec((d_pad, h_pad), lambda i: (0, 0)),          # W1 (resident)
                inv_spec((1, h_pad), lambda i: (0, 0)),              # b1
                inv_spec((h_pad, d_pad), lambda i: (0, 0)),          # W2 (resident)
                inv_spec((3, d_pad), lambda i: (0, 0)),              # b2/gamma/beta
            ],
            out_specs=pl.BlockSpec((row_tile, d_pad), lambda i: (i, 0)),
        )
        dim_sem = ("parallel",)
    else:
        # ---------------- hidden-tiled fallback path, 2-D grid ----------------
        n_hid_tiles = h_pad // ht
        cast_x = (mdt != x.dtype)
        kern = functools.partial(_ffn_kernel_tiled, eps=float(eps),
                                 d_real=d_model, matmul_dtype=mdt, cast_x=cast_x)
        scratch = [pltpu.VMEM((row_tile, d_pad), jnp.float32)]       # accumulator
        if cast_x:
            scratch.append(pltpu.VMEM((row_tile, d_pad), mdt))       # x cast, once/tile
        grid_spec = pltpu.PrefetchScalarGridSpec(
            num_scalar_prefetch=0,
            grid=(n_row_tiles, n_hid_tiles),
            in_specs=[
                pl.BlockSpec((row_tile, d_pad), lambda i, k: (i, 0)),  # x tile
                pl.BlockSpec((d_pad, ht), lambda i, k: (0, k)),        # W1 chunk
                pl.BlockSpec((1, ht), lambda i, k: (0, k)),            # b1 chunk
                pl.BlockSpec((ht, d_pad), lambda i, k: (k, 0)),        # W2 chunk
                inv_spec((3, d_pad), lambda i, k: (0, 0)),             # b2/gamma/beta
            ],
            out_specs=pl.BlockSpec((row_tile, d_pad), lambda i, k: (i, 0)),
            scratch_shapes=scratch,
        )
        dim_sem = ("parallel", "arbitrary")

    out = pl.pallas_call(
        kern,
        out_shape=jax.ShapeDtypeStruct((rows_pad, d_pad), x.dtype),
        grid_spec=grid_spec,
        compiler_params=pltpu.CompilerParams(
            dimension_semantics=dim_sem,
            vmem_limit_bytes=plan['vmem_limit']),
        cost_estimate=cost,
    )(xp, params['w1p'], params['b1p'], params['w2p'], params['pkd'])

    if rows_pad != n_rows or d_pad != d_model:
        out = out[:n_rows, :d_model]
    return out.reshape(orig_shape)


def ffn_pallas(x, w1, b1, w2, b2, gamma, beta, *, eps=1e-5,
               matmul_dtype=None, row_tile=None, hidden_tile=None):
    """Convenience wrapper: plan + prepare + apply.  For repeated calls with
    the same parameters, call plan_ffn/prepare_ffn_params once and reuse."""
    d_model = x.shape[-1]
    hidden = w1.shape[1]
    assert w1.shape == (d_model, hidden) and w2.shape == (hidden, d_model)
    plan = plan_ffn(d_model, hidden, x.dtype, matmul_dtype, hidden_tile=hidden_tile)
    params = prepare_ffn_params(plan, w1, b1, w2, b2, gamma, beta)
    return ffn_apply(x, plan, params, eps=eps, row_tile=row_tile)


# --------------------------------------------------------------------------- #
# reference + self-test
# --------------------------------------------------------------------------- #
def ffn_reference(x, w1, b1, w2, b2, gamma, beta, eps=1e-5, matmul_dtype=None):
    if matmul_dtype is None:
        matmul_dtype = x.dtype
    x32 = x.astype(jnp.float32)
    h = jnp.dot(x.astype(matmul_dtype), w1.astype(matmul_dtype),
                preferred_element_type=jnp.float32) + b1.astype(jnp.float32)
    h = jnp.maximum(h, 0.0)
    y = jnp.dot(h.astype(matmul_dtype), w2.astype(matmul_dtype),
                preferred_element_type=jnp.float32) + b2.astype(jnp.float32)
    y = y + x32
    mean = jnp.mean(y, axis=-1, keepdims=True)
    var = jnp.mean((y - mean) ** 2, axis=-1, keepdims=True)
    return ((y - mean) * lax.rsqrt(var + eps) * gamma.astype(jnp.float32)
            + beta.astype(jnp.float32))


if __name__ == "__main__":
    key = jax.random.PRNGKey(0)

    def make_params(k, d_model, hidden):
        kw1, kb1, kw2, kb2, kg, kb = jax.random.split(k, 6)
        lim1 = 1.0 / (d_model ** 0.5)
        lim2 = 1.0 / (hidden ** 0.5)
        w1 = jax.random.uniform(kw1, (d_model, hidden), jnp.float32, -lim1, lim1)
        b1 = jax.random.uniform(kb1, (hidden,), jnp.float32, -lim1, lim1)
        w2 = jax.random.uniform(kw2, (hidden, d_model), jnp.float32, -lim2, lim2)
        b2 = jax.random.uniform(kb2, (d_model,), jnp.float32, -lim2, lim2)
        gamma = 1.0 + 0.1 * jax.random.normal(kg, (d_model,), jnp.float32)
        beta = 0.1 * jax.random.normal(kb, (d_model,), jnp.float32)
        return w1, b1, w2, b2, gamma, beta

    kp1, kp2, kp3, kx1, kx2, kx3 = jax.random.split(key, 6)

    # Case 1: tiny module-spec shapes, exact f32 MXU path (weights resident).
    batch, seq, d_model, hidden = 2, 8, 32, 64
    x = jax.random.normal(kx1, (batch, seq, d_model), jnp.float32)
    p = make_params(kp1, d_model, hidden)
    out = jax.block_until_ready(ffn_pallas(x, *p, matmul_dtype=jnp.float32))
    ref = ffn_reference(x, *p)
    assert out.shape == x.shape
    assert jnp.allclose(out, ref, atol=1e-4, rtol=1e-4), "f32 path mismatch"

    # Case 2: default bf16-operand path, ragged rows, weights resident,
    # cached prepare + apply (the recommended calling pattern).
    batch, seq, d_model, hidden = 2, 200, 192, 384
    x = jax.random.normal(kx2, (batch, seq, d_model), jnp.float32)
    w1, b1, w2, b2, gamma, beta = make_params(kp2, d_model, hidden)
    plan = plan_ffn(d_model, hidden, x.dtype)             # bf16 MXU operands by default
    prepped = prepare_ffn_params(plan, w1, b1, w2, b2, gamma, beta)
    out = jax.block_until_ready(ffn_apply(x, plan, prepped))
    ref = ffn_reference(x, w1, b1, w2, b2, gamma, beta, matmul_dtype=jnp.bfloat16)
    assert out.shape == x.shape
    assert jnp.allclose(out, ref, atol=2e-2, rtol=2e-2), "bf16 resident path mismatch"

    # Case 3: forced hidden tiling (VMEM-fallback accumulator path).
    batch, seq, d_model, hidden = 2, 24, 64, 256
    x = jax.random.normal(kx3, (batch, seq, d_model), jnp.float32)
    p = make_params(kp3, d_model, hidden)
    out = jax.block_until_ready(ffn_pallas(x, *p, hidden_tile=128))
    ref = ffn_reference(x, *p, matmul_dtype=jnp.bfloat16)
    assert out.shape == x.shape
    assert jnp.allclose(out, ref, atol=2e-2, rtol=2e-2), "tiled path mismatch"

    print("KERNEL_OK")
</pallas_src>

<mosaic_0001>
module attributes {stable_mosaic.version = 11 : i64} {
  func.func @_probe_kernel(%arg0: i32, %arg1: memref<8x128xf32, #tpu.memory_space<vmem>>, %arg2: memref<8x128xf32, #tpu.memory_space<vmem>>) attributes {dimension_semantics = [#tpu.dimension_semantics<arbitrary>], iteration_bounds = array<i64: 1>, scalar_prefetch = 0 : i64, scratch_operands = 0 : i64, tpu.core_type = #tpu.core_type<tc>, window_params = [{pipeline_mode = #tpu.pipeline_mode<synchronous>, transform_indices = @transform_0, window_bounds = array<i64: 8, 128>}, {pipeline_mode = #tpu.pipeline_mode<synchronous>, transform_indices = @transform_1, window_bounds = array<i64: 8, 128>}]} {
    %c0 = arith.constant 0 : index
    %c0_0 = arith.constant 0 : index
    %0 = vector.load %arg1[%c0, %c0_0] : memref<8x128xf32, #tpu.memory_space<vmem>>, vector<8x128xf32>
    %c0_1 = arith.constant 0 : index
    %c0_2 = arith.constant 0 : index
    %1 = vector.load %arg2[%c0_1, %c0_2] : memref<8x128xf32, #tpu.memory_space<vmem>>, vector<8x128xf32>
    tpu.vector_store %arg2[%c0_1, %c0_2], %0 {strides = array<i32>} : memref<8x128xf32, #tpu.memory_space<vmem>>, vector<8x128xf32>,
    return
  }
  func.func @transform_0(%arg0: i32) -> (i32, i32) {
    %c0_i32 = arith.constant 0 : i32
    %c0_i32_0 = arith.constant 0 : i32
    %c0_i32_1 = arith.constant 0 : i32
    return %c0_i32, %c0_i32_0 : i32, i32
  }
  func.func @transform_1(%arg0: i32) -> (i32, i32) {
    %c0_i32 = arith.constant 0 : i32
    %c0_i32_0 = arith.constant 0 : i32
    %c0_i32_1 = arith.constant 0 : i32
    return %c0_i32, %c0_i32_0 : i32, i32
  }
}

module attributes {stable_mosaic.version = 11 : i64} {
  func.func @_ffn_kernel_resident(%arg0: i32, %arg1: memref<16x128xf32, #tpu.memory_space<vmem>>, %arg2: memref<128x128xf32, #tpu.memory_space<vmem>>, %arg3: memref<1x128xf32, #tpu.memory_space<vmem>>, %arg4: memref<128x128xf32, #tpu.memory_space<vmem>>, %arg5: memref<3x128xf32, #tpu.memory_space<vmem>>, %arg6: memref<16x128xf32, #tpu.memory_space<vmem>>) attributes {dimension_semantics = [#tpu.dimension_semantics<parallel>], iteration_bounds = array<i64: 1>, scalar_prefetch = 0 : i64, scratch_operands = 0 : i64, tpu.core_type = #tpu.core_type<tc>, window_params = [{transform_indices = @transform_0, window_bounds = array<i64: 16, 128>}, {pipeline_mode = #tpu.pipeline_mode<synchronous>, transform_indices = @transform_1, window_bounds = array<i64: 128, 128>}, {pipeline_mode = #tpu.pipeline_mode<synchronous>, transform_indices = @transform_2, window_bounds = array<i64: 1, 128>}, {pipeline_mode = #tpu.pipeline_mode<synchronous>, transform_indices = @transform_3, window_bounds = array<i64: 128, 128>}, {pipeline_mode = #tpu.pipeline_mode<synchronous>, transform_indices = @transform_4, window_bounds = array<i64: 3, 128>}, {transform_indices = @transform_5, window_bounds = array<i64: 16, 128>}]} {
    %c0 = arith.constant 0 : index
    %c0_0 = arith.constant 0 : index
    %0 = vector.load %arg1[%c0, %c0_0] : memref<16x128xf32, #tpu.memory_space<vmem>>, vector<16x128xf32>
    %c0_1 = arith.constant 0 : index
    %c0_2 = arith.constant 0 : index
    %1 = vector.load %arg2[%c0_1, %c0_2] : memref<128x128xf32, #tpu.memory_space<vmem>>, vector<128x128xf32>
    %cst = arith.constant dense<0.000000e+00> : vector<16x128xf32>
    %2 = tpu.matmul %0, %1, %cst {dimension_numbers = #tpu.dot_dimension_numbers<[1], [0], [0], [1], [0, 0, 1, 1], [], []>} : vector<16x128xf32>, vector<128x128xf32>, vector<16x128xf32> -> vector<16x128xf32>
    %c0_3 = arith.constant 0 : index
    %c0_4 = arith.constant 0 : index
    %3 = vector.load %arg3[%c0_3, %c0_4] : memref<1x128xf32, #tpu.memory_space<vmem>>, vector<1x128xf32>
    %4 = vector.broadcast %3 : vector<1x128xf32> to vector<16x128xf32>
    %5 = arith.addf %2, %4 : vector<16x128xf32>
    %cst_5 = arith.constant 0.000000e+00 : f32
    %6 = vector.broadcast %cst_5 : f32 to vector<16x128xf32>
    %7 = arith.maximumf %5, %6 : vector<16x128xf32>
    %c0_6 = arith.constant 0 : index
    %c0_7 = arith.constant 0 : index
    %8 = vector.load %arg4[%c0_6, %c0_7] : memref<128x128xf32, #tpu.memory_space<vmem>>, vector<128x128xf32>
    %cst_8 = arith.constant dense<0.000000e+00> : vector<16x128xf32>
    %9 = tpu.matmul %7, %8, %cst_8 {dimension_numbers = #tpu.dot_dimension_numbers<[1], [0], [0], [1], [0, 0, 1, 1], [], []>} : vector<16x128xf32>, vector<128x128xf32>, vector<16x128xf32> -> vector<16x128xf32>
    %c0_9 = arith.constant 0 : index
    %c0_10 = arith.constant 0 : index
    %10 = vector.load %arg5[%c0_9, %c0_10] : memref<3x128xf32, #tpu.memory_space<vmem>>, vector<3x128xf32>
    %11 = vector.extract_strided_slice %10 {offsets = [0, 0], sizes = [1, 128], strides = [1, 1]} : vector<3x128xf32> to vector<1x128xf32>
    %12 = vector.broadcast %11 : vector<1x128xf32> to vector<16x128xf32>
    %13 = arith.addf %9, %12 : vector<16x128xf32>
    %14 = arith.addf %13, %0 : vector<16x128xf32>
    %cst_11 = arith.constant dense<0.000000e+00> : vector<16xf32>
    %15 = vector.multi_reduction <add>, %14, %cst_11 [1] : vector<16x128xf32> to vector<16xf32>
    %16 = vector.shape_cast %15 : vector<16xf32> to vector<16x1xf32>
    %cst_12 = arith.constant 3.125000e-02 : f32
    %17 = vector.broadcast %cst_12 : f32 to vector<16x1xf32>
    %18 = arith.mulf %16, %17 : vector<16x1xf32>
    %19 = vector.broadcast %18 : vector<16x1xf32> to vector<16x128xf32>
    %20 = arith.subf %14, %19 : vector<16x128xf32>
    %21 = tpu.iota {dimensions = array<i32: 1>} : vector<1x128xi32>
    %c32_i32 = arith.constant 32 : i32
    %22 = vector.broadcast %c32_i32 : i32 to vector<1x128xi32>
    %23 = arith.cmpi slt, %21, %22 : vector<1x128xi32>
    %cst_13 = arith.constant 0.000000e+00 : f32
    %24 = vector.shape_cast %23 : vector<1x128xi1> to vector<1x128xi1>
    %25 = vector.broadcast %24 : vector<1x128xi1> to vector<16x128xi1>
    %26 = vector.broadcast %cst_13 : f32 to vector<16x128xf32>
    %27 = arith.select %25, %20, %26 : vector<16x128xi1>, vector<16x128xf32>
    %28 = arith.mulf %27, %27 : vector<16x128xf32>
    %cst_14 = arith.constant dense<0.000000e+00> : vector<16xf32>
    %29 = vector.multi_reduction <add>, %28, %cst_14 [1] : vector<16x128xf32> to vector<16xf32>
    %30 = vector.shape_cast %29 : vector<16xf32> to vector<16x1xf32>
    %cst_15 = arith.constant 3.125000e-02 : f32
    %31 = vector.broadcast %cst_15 : f32 to vector<16x1xf32>
    %32 = arith.mulf %30, %31 : vector<16x1xf32>
    %cst_16 = arith.constant 9.99999974E-6 : f32
    %33 = vector.broadcast %cst_16 : f32 to vector<16x1xf32>
    %34 = arith.addf %32, %33 : vector<16x1xf32>
    %35 = math.rsqrt %34 : vector<16x1xf32>
    %36 = vector.broadcast %35 : vector<16x1xf32> to vector<16x128xf32>
    %37 = arith.mulf %27, %36 : vector<16x128xf32>
    %38 = vector.extract_strided_slice %10 {offsets = [1, 0], sizes = [1, 128], strides = [1, 1]} : vector<3x128xf32> to vector<1x128xf32>
    %39 = vector.broadcast %38 : vector<1x128xf32> to vector<16x128xf32>
    %40 = arith.mulf %37, %39 : vector<16x128xf32>
    %41 = vector.extract_strided_slice %10 {offsets = [2, 0], sizes = [1, 128], strides = [1, 1]} : vector<3x128xf32> to vector<1x128xf32>
    %42 = vector.broadcast %41 : vector<1x128xf32> to vector<16x128xf32>
    %43 = arith.addf %40, %42 : vector<16x128xf32>
    %c0_17 = arith.constant 0 : index
    %c0_18 = arith.constant 0 : index
    %44 = vector.load %arg6[%c0_17, %c0_18] : memref<16x128xf32, #tpu.memory_space<vmem>>, vector<16x128xf32>
    tpu.vector_store %arg6[%c0_17, %c0_18], %43 {strides = array<i32>} : memref<16x128xf32, #tpu.memory_space<vmem>>, vector<16x128xf32>,
    return
  }
  func.func @transform_0(%arg0: i32) -> (i32, i32) {
    %c0_i32 = arith.constant 0 : i32
    %c0_i32_0 = arith.constant 0 : i32
    return %arg0, %c0_i32 : i32, i32
  }
  func.func @transform_1(%arg0: i32) -> (i32, i32) {
    %c0_i32 = arith.constant 0 : i32
    %c0_i32_0 = arith.constant 0 : i32
    %c0_i32_1 = arith.constant 0 : i32
    return %c0_i32, %c0_i32_0 : i32, i32
  }
  func.func @transform_2(%arg0: i32) -> (i32, i32) {
    %c0_i32 = arith.constant 0 : i32
    %c0_i32_0 = arith.constant 0 : i32
    %c0_i32_1 = arith.constant 0 : i32
    return %c0_i32, %c0_i32_0 : i32, i32
  }
  func.func @transform_3(%arg0: i32) -> (i32, i32) {
    %c0_i32 = arith.constant 0 : i32
    %c0_i32_0 = arith.constant 0 : i32
    %c0_i32_1 = arith.constant 0 : i32
    return %c0_i32, %c0_i32_0 : i32, i32
  }
  func.func @transform_4(%arg0: i32) -> (i32, i32) {
    %c0_i32 = arith.constant 0 : i32
    %c0_i32_0 = arith.constant 0 : i32
    %c0_i32_1 = arith.constant 0 : i32
    return %c0_i32, %c0_i32_0 : i32, i32
  }
  func.func @transform_5(%arg0: i32) -> (i32, i32) {
    %c0_i32 = arith.constant 0 : i32
    %c0_i32_0 = arith.constant 0 : i32
    return %arg0, %c0_i32 : i32, i32
  }
}

</mosaic_0001>

<bundles_post_ra>
// kernel: tpu_custom_call.1
= control target key start
LH: loop header
LB: loop body
LE: loop exit
PB: predicated region body
PF: predicated region fallthrough
CT: control target
= control target key end

     0   :  { %6 = vsyncpa [#allocation3], 0  ;;  %s102_s0 = inlined_call_operand.hbm [shape: f32[8,128], index: 0, kind: input, shape index: {}]   ;;  %s103_s1 = inlined_call_operand.hbm [shape: f32[8,128], index: 1, kind: output, shape index: {}]  }
   0x1   :  { %7 = vsyncpa [#allocation4], 0  ;;  %s84_s6 = smov [#allocation2]  }
   0x2   :  { %s14_s7 = sshll.u32 %s84_s6, 4  ;;  %s15_s7 = int_to_ptr.vmem [resolvable:$true] %s14_s7 }
   0x3   :  { %s48_s8 = scalar_lea.vmem %s15_s7, 128  ;;  %p53_p1 = scmp.lt.s32.totalorder %s15_s7, %s15_s7 }
   0x4   :  { %p49_p0 = scmp.ne.s32.totalorder %s15_s7, %s48_s8  ;;  %p54_p2 = scmp.lt.s32.totalorder %s48_s8, %s48_s8 }
   0x6   :  { %p55_p3 = por %p54_p2, %p53_p1 }
   0x8   :  { %p56_p4 = pnand %p55_p3, %p49_p0 }
   0xa   :  { %59 = shalt.err (!%p56_p4)
}
   0xb   :  { %17 = dma.hbm_to_vmem [thread:$0]  %s102_s0, 128, %s15_s7, [#allocation3]  }
   0xc   :  { %80 = dma.done.wait [#allocation3], 128  }
   0xd   :  { %81 = vsyncadd [#allocation3], 4294967168  ;;  %s85_s11 = smov [#allocation5]   ;;  %v21_v0 = vld [vmem:[#allocation2] sm:$0xff] }
   0xe   :  { %s29_s12 = sshll.u32 %s85_s11, 4  ;;  %22 = vst [vmem:[#allocation5] sm:$0xff] %v21_v0  ;;  %s30_s12 = int_to_ptr.vmem [resolvable:$true] %s29_s12 }
   0xf   :  { %s60_s13 = scalar_lea.vmem %s30_s12, 128  ;;  %p65_p6 = scmp.lt.s32.totalorder %s30_s12, %s30_s12 }
  0x10   :  { %p61_p5 = scmp.ne.s32.totalorder %s30_s12, %s60_s13  ;;  %p66_p7 = scmp.lt.s32.totalorder %s60_s13, %s60_s13 }
  0x12   :  { %p67_p8 = por %p66_p7, %p65_p6 }
  0x14   :  { %p68_p9 = pnand %p67_p8, %p61_p5 }
  0x16   :  { %71 = shalt.err (!%p68_p9)
}
  0x17   :  { %32 = dma.vmem_to_hbm [thread:$0]  %s30_s12, 128, %s103_s1, [#allocation4]  }
  0x18   :  { %82 = dma.done.wait [#allocation4], 128  }
  0x19   :  { %83 = vsyncadd [#allocation4], 4294967168 }
  0x1a   :  { %36 = vsyncpa [#allocation3], 1 }
  0x1b   :  { %37 = vsyncpa [#allocation4], 1 }

// kernel: tpu_custom_call.1
= control target key start
LH: loop header
LB: loop body
LE: loop exit
PB: predicated region body
PF: predicated region fallthrough
CT: control target
= control target key end

     0   :  { %10 = vsyncpa [#allocation3], 0  ;;  %s596_s0 = inlined_call_operand.hbm [shape: f32[16,128], index: 0, kind: input, shape index: {}]   ;;  %s597_s1 = inlined_call_operand.hbm [shape: f32[128,128], index: 1, kind: input, shape index: {}]   ;;  %s598_s2 = inlined_call_operand.vmem [shape: f32[1,128], index: 2, kind: input, shape index: {}]   ;;  %s599_s3 = inlined_call_operand.hbm [shape: f32[128,128], index: 3, kind: input, shape index: {}]   ;;  %s600_s4 = inlined_call_operand.vmem [shape: f32[3,128], index: 4, kind: input, shape index: {}]   ;;  %s601_s5 = inlined_call_operand.hbm [shape: f32[16,128], index: 5, kind: output, shape index: {}]  }
   0x1   :  { %11 = vsyncpa [#allocation6], 0 }
   0x2   :  { %12 = vsyncpa [#allocation4], 0  ;;  %s526_s18 = smov [#allocation5]   ;;  %s527_s20 = smov [#allocation2]  }
   0x3   :  { %s30_s19 = sshll.u32 %s526_s18, 4  ;;  %s18_s21 = sshll.u32 %s527_s20, 4  ;;  %s31_s19 = int_to_ptr.vmem [resolvable:$true] %s30_s19  ;;  %s19_s21 = int_to_ptr.vmem [resolvable:$true] %s18_s21 }
   0x4   :  { %s448_s22 = scalar_lea.vmem %s31_s19, 2048  ;;  %p453_p1 = scmp.lt.s32.totalorder %s31_s19, %s31_s19 }
   0x5   :  { %p449_p0 = scmp.ne.s32.totalorder %s31_s19, %s448_s22  ;;  %p454_p2 = scmp.lt.s32.totalorder %s448_s22, %s448_s22 }
   0x7   :  { %p455_p3 = por %p454_p2, %p453_p1 }
   0x9   :  { %p456_p4 = pnand %p455_p3, %p449_p0 }
   0xb   :  { %459 = shalt.err (!%p456_p4)
}
   0xc   :  { %s528_s23 = smov 128   ;;  %s529_s24 = smov 8  }
   0xd   :  { %36 = dma.hbm_to_vmem [thread:$0]  %s597_s1, 2048, %s31_s19, [#allocation6], %s528_s23, %s528_s23, %s529_s24  }
   0xe   :  { %s468_s27 = scalar_lea.vmem %s19_s21, 256  ;;  %p473_p6 = scmp.lt.s32.totalorder %s19_s21, %s19_s21 }
   0xf   :  { %p469_p5 = scmp.ne.s32.totalorder %s19_s21, %s468_s27  ;;  %p474_p7 = scmp.lt.s32.totalorder %s468_s27, %s468_s27 }
  0x11   :  { %p475_p8 = por %p474_p7, %p473_p6 }
  0x13   :  { %p476_p9 = pnand %p475_p8, %p469_p5 }
  0x15   :  { %479 = shalt.err (!%p476_p9)
}
  0x16   :  { %24 = dma.hbm_to_vmem [thread:$0]  %s596_s0, 256, %s19_s21, [#allocation3], %s528_s23, %s528_s23, %s529_s24  }
  0x17   :  { %s530_s30 = smov [#allocation7]  }
  0x18   :  { %s44_s6 = sshll.u32 %s530_s30, 4  ;;  %s45_s6 = int_to_ptr.vmem [resolvable:$true] %s44_s6 }
  0x19   :  { %s488_s7 = scalar_lea.vmem %s45_s6, 2048  ;;  %p493_p11 = scmp.lt.s32.totalorder %s45_s6, %s45_s6 }
  0x1a   :  { %p489_p10 = scmp.ne.s32.totalorder %s45_s6, %s488_s7  ;;  %p494_p12 = scmp.lt.s32.totalorder %s488_s7, %s488_s7 }
  0x1c   :  { %p495_p13 = por %p494_p12, %p493_p11 }
  0x1e   :  { %p496_p0 = pnand %p495_p13, %p489_p10 }
  0x20   :  { %499 = shalt.err (!%p496_p0)
}
  0x21   :  { %50 = dma.hbm_to_vmem [thread:$0]  %s599_s3, 2048, %s45_s6, [#allocation6], %s528_s23, %s528_s23, %s529_s24  }
  0x22   :  { %520 = dma.done.wait [#allocation3], 256  }
  0x23   :  { %521 = vsyncadd [#allocation3], 4294967040 }
  0x24   :  { %522 = dma.done.wait [#allocation6], 4096  }
  0x25   :  { %523 = vsyncadd [#allocation6], 4294963200  ;;  %v79_v0 = vld [vmem:[#allocation5 + $0x78] sm:$0xff]  ;;  %v78_v1 = vld [vmem:[#allocation5 + $0x70] sm:$0xff]  ;;  %v181_v41 = vlaneseq }
  0x26   :  { %360 = vmatprep.subr.mxu0 %v79_v0  ;;  %v77_v2 = vld [vmem:[#allocation5 + $0x68] sm:$0xff]  ;;  %v76_v3 = vld [vmem:[#allocation5 + $0x60] sm:$0xff]  ;;  %v580_v4 = vld [vmem:[#allocation2] sm:$0xff] }
  0x27   :  { %361 = vmatpush3.msra.mxu0 %v79_v0  ;;  %v75_v5 = vld [vmem:[#allocation5 + $0x58] sm:$0xff]  ;;  %392 = vmatprep.mubr.f32.mxu0 %v580_v4  ;;  %v178_v7 = vld [vmem:[#allocation7 + $0x70] sm:$0xff]  ;;  %v177_v9 = vld [vmem:[#allocation7 + $0x68] sm:$0xff]  ;;  %v182_v42 = vshrl.u32 %v181_v41, 7  ;;  %v271_v52 = vand.u32 127, %v181_v41 }
  0x28   :  { %362 = vmatprep.subr.mxu0 %v78_v1  ;;  %v179_v6 = vld [vmem:[#allocation7 + $0x78] sm:$0xff]  ;;  %v74_v8 = vld [vmem:[#allocation5 + $0x50] sm:$0xff]  ;;  %v73_v10 = vld [vmem:[#allocation5 + $0x48] sm:$0xff] }
  0x29   :  { %363 = vmatpush3.msra.mxu0 %v78_v1  ;;  %395 = vmatprep.subr.mxu1 %v179_v6  ;;  %v176_v11 = vld [vmem:[#allocation7 + $0x60] sm:$0xff]  ;;  %v175_v13 = vld [vmem:[#allocation7 + $0x58] sm:$0xff]  ;;  %v174_v15 = vld [vmem:[#allocation7 + $0x50] sm:$0xff]  ;;  %v183_v43 = vsub.s32 0, %v182_v42  ;;  %vm272_vm0 = vcmp.lt.s32.totalorder %v271_v52, 32 }
  0x2a   :  { %364 = vmatprep.subr.mxu0 %v77_v2  ;;  %396 = vmatpush3.msra.mxu1 %v179_v6  ;;  %v72_v12 = vld [vmem:[#allocation5 + $0x40] sm:$0xff]  ;;  %v71_v14 = vld [vmem:[#allocation5 + $0x38] sm:$0xff]  ;;  %v70_v16 = vld [vmem:[#allocation5 + $0x30] sm:$0xff]  ;;  %v299_v6 = vsub.s32 2, %v182_v42 }
  0x2b   :  { %365 = vmatpush3.msra.mxu0 %v77_v2  ;;  %397 = vmatprep.subr.mxu1 %v178_v7  ;;  %v173_v17 = vld [vmem:[#allocation7 + $0x48] sm:$0xff]  ;;  %v172_v19 = vld [vmem:[#allocation7 + $0x40] sm:$0xff]  ;;  %v171_v21 = vld [vmem:[#allocation7 + $0x38] sm:$0xff] }
  0x2c   :  { %366 = vmatprep.subr.mxu0 %v76_v3  ;;  %398 = vmatpush3.msra.mxu1 %v178_v7  ;;  %v69_v18 = vld [vmem:[#allocation5 + $0x28] sm:$0xff]  ;;  %v68_v20 = vld [vmem:[#allocation5 + $0x20] sm:$0xff]  ;;  %v67_v22 = vld [vmem:[#allocation5 + $0x18] sm:$0xff] }
  0x2d   :  { %367 = vmatpush3.msra.mxu0 %v76_v3  ;;  %399 = vmatprep.subr.mxu1 %v177_v9  ;;  %v170_v23 = vld [vmem:[#allocation7 + $0x30] sm:$0xff]  ;;  %v169_v25 = vld [vmem:[#allocation7 + $0x28] sm:$0xff]  ;;  %v168_v27 = vld [vmem:[#allocation7 + $0x20] sm:$0xff] }
  0x2e   :  { %368 = vmatprep.subr.mxu0 %v75_v5  ;;  %400 = vmatpush3.msra.mxu1 %v177_v9  ;;  %v66_v24 = vld [vmem:[#allocation5 + $0x10] sm:$0xff]  ;;  %v65_v26 = vld [vmem:[#allocation5 + $0x8] sm:$0xff]  ;;  %v64_v28 = vld [vmem:[#allocation5] sm:$0xff] }
  0x2f   :  { %369 = vmatpush3.msra.mxu0 %v75_v5  ;;  %401 = vmatprep.subr.mxu1 %v176_v11  ;;  %v63_v29 = vld [vmem:[#allocation2 + $0x8] sm:$0xff]  ;;  %v166_v31 = vld [vmem:[#allocation7 + $0x10] sm:$0xff]  ;;  %v165_v32 = vld [vmem:[#allocation7 + $0x8] sm:$0xff]  ;;  %v293_v5 = vsub.s32 1, %v182_v42 }
  0x30   :  { %370 = vmatprep.subr.mxu0 %v74_v8  ;;  %402 = vmatpush3.msra.mxu1 %v176_v11  ;;  %v167_v30 = vld [vmem:[#allocation7 + $0x18] sm:$0xff]  ;;  %v164_v33 = vld [vmem:[#allocation7] sm:$0xff]  ;;  %v323_v34 = vld [vmem:[%s598_s2] ss:$0 sm:$0xff]  ;;  %s531_s2 = smov [#allocation8]  }
  0x31   :  { %371 = vmatpush3.msra.mxu0 %v74_v8  ;;  %403 = vmatprep.subr.mxu1 %v175_v13  ;;  %v180_v44 = vld [vmem:[%s600_s4] sm:$0x7]  ;;  %s310_s4 = sshll.u32 %s531_s2, 4  ;;  %s311_s4 = int_to_ptr.vmem [resolvable:$true] %s310_s4 }
  0x32   :  { %372 = vmatprep.subr.mxu0 %v73_v10  ;;  %404 = vmatpush3.msra.mxu1 %v175_v13  ;;  %v184_v46 = vrot.slane %v180_v44, %v183_v43  ;;  %v294_v7 = vrot.slane %v180_v44, %v293_v5  ;;  %v300_v9 = vrot.slane %v180_v44, %v299_v6  ;;  %s500_s11 = scalar_lea.vmem %s311_s4, 256  ;;  %p505_p2 = scmp.lt.s32.totalorder %s311_s4, %s311_s4 }
  0x33   :  { %373 = vmatpush3.msra.mxu0 %v73_v10  ;;  %405 = vmatprep.subr.mxu1 %v174_v15  ;;  %p501_p1 = scmp.ne.s32.totalorder %s311_s4, %s500_s11  ;;  %p506_p3 = scmp.lt.s32.totalorder %s500_s11, %s500_s11 }
  0x34   :  { %374 = vmatprep.subr.mxu0 %v72_v12  ;;  %406 = vmatpush3.msra.mxu1 %v174_v15 }
  0x35   :  { %375 = vmatpush3.msra.mxu0 %v72_v12  ;;  %407 = vmatprep.subr.mxu1 %v173_v17  ;;  %p507_p4 = por %p506_p3, %p505_p2 }
  0x36   :  { %376 = vmatprep.subr.mxu0 %v71_v14  ;;  %408 = vmatpush3.msra.mxu1 %v173_v17 }
  0x37   :  { %377 = vmatpush3.msra.mxu0 %v71_v14  ;;  %409 = vmatprep.subr.mxu1 %v172_v19  ;;  %p508_p5 = pnand %p507_p4, %p501_p1 }
  0x38   :  { %378 = vmatprep.subr.mxu0 %v70_v16  ;;  %410 = vmatpush3.msra.mxu1 %v172_v19 }
  0x39   :  { %379 = vmatpush3.msra.mxu0 %v70_v16  ;;  %411 = vmatprep.subr.mxu1 %v171_v21 }
  0x3a   :  { %380 = vmatprep.subr.mxu0 %v69_v18  ;;  %412 = vmatpush3.msra.mxu1 %v171_v21 }
  0x3b   :  { %381 = vmatpush3.msra.mxu0 %v69_v18  ;;  %413 = vmatprep.subr.mxu1 %v170_v23 }
  0x3c   :  { %382 = vmatprep.subr.mxu0 %v68_v20  ;;  %414 = vmatpush3.msra.mxu1 %v170_v23 }
  0x3d   :  { %383 = vmatpush3.msra.mxu0 %v68_v20  ;;  %415 = vmatprep.subr.mxu1 %v169_v25 }
  0x3e   :  { %384 = vmatprep.subr.mxu0 %v67_v22  ;;  %416 = vmatpush3.msra.mxu1 %v169_v25 }
  0x3f   :  { %385 = vmatpush3.msra.mxu0 %v67_v22  ;;  %417 = vmatprep.subr.mxu1 %v168_v27 }
  0x40   :  { %386 = vmatprep.subr.mxu0 %v66_v24  ;;  %418 = vmatpush3.msra.mxu1 %v168_v27 }
  0x41   :  { %387 = vmatpush3.msra.mxu0 %v66_v24  ;;  %419 = vmatprep.subr.mxu1 %v167_v30 }
  0x42   :  { %388 = vmatprep.subr.mxu0 %v65_v26  ;;  %420 = vmatpush3.msra.mxu1 %v167_v30 }
  0x43   :  { %389 = vmatpush3.msra.mxu0 %v65_v26  ;;  %421 = vmatprep.subr.mxu1 %v166_v31 }
  0x44   :  { %390 = vmatprep.subr.mxu0 %v64_v28  ;;  %422 = vmatpush3.msra.mxu1 %v166_v31 }
  0x45   :  { %391 = vmatpush3.msra.mxu0 %v64_v28  ;;  %423 = vmatprep.subr.mxu1 %v165_v32 }
  0x46   :  { %393 = vmatmul.mubr.f32.vlgmr.msra.gmra.mxu0 %v63_v29  ;;  %424 = vmatpush3.msra.mxu1 %v165_v32 }
  0x47   :  { %425 = vmatprep.subr.mxu1 %v164_v33 }
  0x48   :  { %426 = vmatpush3.msra.mxu1 %v164_v33 }
 0x106   :  { %v394_v35 = vpop.f32.mrf.mxu0 }
 0x107   :  { %v159_v36 = vadd.f32 %v394_v35, %v323_v34 }
 0x108   :  { %v153_v37 = vpop.f32.mrf.mxu0 }
 0x109   :  { %v154_v38 = vadd.f32 %v323_v34, %v153_v37  ;;  %v163_v40 = vmax.f32 %v159_v36, 0.0 }
 0x10b   :  { %v162_v39 = vmax.f32 %v154_v38, 0.0 }
 0x10d   :  { %427 = vmatprep.mubr.f32.mxu1 %v162_v39 }
 0x10e   :  { %428 = vmatmul.mubr.f32.vlgmr.msra.gmra.mxu1 %v163_v40 }
 0x1ce   :  { %v429_v45 = vpop.f32.mrf.mxu1 }
 0x1cf   :  { %v257_v49 = vadd.f32 %v429_v45, %v184_v46 }
 0x1d0   :  { %v251_v47 = vpop.f32.mrf.mxu1 }
 0x1d1   :  { %v252_v48 = vadd.f32 %v251_v47, %v184_v46  ;;  %v261_v51 = vadd.f32 %v257_v49, %v63_v29 }
 0x1d3   :  { %v260_v50 = vadd.f32 %v252_v48, %v580_v4 }
 0x1d5   :  { %262 = vadd.xlane.f32.xlu0 %v260_v50 }
 0x1d9   :  { %264 = vadd.xlane.f32.xlu0 %v261_v51 }
 0x25e   :  { %v263_v53 = vpop.xlane.xlu0 %262 }
 0x25f   :  { %v266_v54 = vmul.f32 0.03125, %v263_v53 }
 0x261   :  { %v268_v55 = vsub.f32 %v260_v50, %v266_v54 }
 0x262   :  { %v265_v56 = vpop.xlane.xlu0 %264 }
 0x263   :  { %v267_v57 = vmul.f32 0.03125, %v265_v56  ;;  %v275_v58 = vsel %vm272_vm0, %v268_v55, 0.0 }
 0x264   :  { %v277_v59 = vmul.f32 %v275_v58, %v275_v58 }
 0x265   :  { %v269_v60 = vsub.f32 %v261_v51, %v267_v57 }
 0x266   :  { %279 = vadd.xlane.f32.xlu1 %v277_v59 }
 0x267   :  { %v276_v61 = vsel %vm272_vm0, %v269_v60, 0.0 }
 0x268   :  { %v278_v62 = vmul.f32 %v276_v61, %v276_v61 }
 0x26a   :  { %281 = vadd.xlane.f32.xlu1 %v278_v62 }
 0x2ef   :  { %v280_v63 = vpop.xlane.xlu1 %279 }
 0x2f0   :  { %v283_v0 = vmul.f32 0.03125, %v280_v63 }
 0x2f2   :  { %v285_v1 = vadd.f32 1e-05, %v283_v0 }
 0x2f3   :  { %v282_v2 = vpop.xlane.xlu1 %281 }
 0x2f4   :  { %436 = vrsqrt.f32 %v285_v1  ;;  %v284_v3 = vmul.f32 0.03125, %v282_v2 }
 0x2f6   :  { %v286_v4 = vadd.f32 1e-05, %v284_v3 }
 0x2f8   :  { %438 = vrsqrt.f32 %v286_v4 }
 0x301   :  { %v437_v8 = vpop.eup %436 }
 0x302   :  { %v289_v10 = vmul.f32 %v437_v8, %v275_v58 }
 0x304   :  { %v295_v11 = vmul.f32 %v294_v7, %v289_v10 }
 0x305   :  { %v439_v12 = vpop.eup %438 }
 0x306   :  { %v290_v13 = vmul.f32 %v439_v12, %v276_v61  ;;  %v301_v14 = vadd.f32 %v300_v9, %v295_v11 }
 0x308   :  { %v296_v15 = vmul.f32 %v294_v7, %v290_v13  ;;  %303 = vst [vmem:[#allocation8] sm:$0xff] %v301_v14 }
 0x30a   :  { %v302_v16 = vadd.f32 %v300_v9, %v296_v15 }
 0x30c   :  { %304 = vst [vmem:[#allocation8 + $0x8] sm:$0xff] %v302_v16 }
 0x30d   :  { %511 = shalt.err (!%p508_p5)
}
 0x30e   :  { %316 = dma.vmem_to_hbm [thread:$0]  %s311_s4, 256, %s601_s5, [#allocation4], %s528_s23, %s528_s23, %s529_s24  }
 0x30f   :  { %524 = dma.done.wait [#allocation4], 256  }
 0x310   :  { %525 = vsyncadd [#allocation4], 4294967040 }
 0x311   :  { %320 = vsyncpa [#allocation3], 1 }
 0x312   :  { %321 = vsyncpa [#allocation6], 1 }
 0x313   :  { %322 = vsyncpa [#allocation4], 1 }

</bundles_post_ra>
